<compile_context>
chip_gen: v6e
topology: v6e:2x2x1
jax: 0.10.0
libtpu: 0.0.40
codegen_flags: <defaults>
</compile_context>

<pallas_src>
import functools
import math

import jax
import jax.numpy as jnp
from jax.experimental import pallas as pl
from jax.experimental.pallas import tpu as pltpu


def _round_up(n, m):
    return ((n + m - 1) // m) * m


def _build_layout(input_dim, hidden_dim, latent_dim):
    """Row layout of the packed parameter slab: name -> (row_offset, n_rows, n_cols)."""
    hi = input_dim + hidden_dim          # encoder input width (cat([h, x]))
    d1, d2, d3 = hi // 2, hi // 4, hi // 8
    di = latent_dim + hidden_dim         # decoder input width (cat([z, h]))
    entries = (
        ("w1x", input_dim, d1), ("b1", 1, d1),          # x-rows only (h rows are dead)
        ("w2", d1, d2),         ("b2", 1, d2),
        ("w3", d2, d3),         ("b3", 1, d3),
        ("w4", d3, 2 * latent_dim), ("b4", 1, 2 * latent_dim),   # fused mean|log_var head
        ("wd1z", latent_dim, 2 * di), ("bd1", 1, 2 * di),        # z-rows only (h rows dead)
        ("wd2", 2 * di, input_dim),   ("bd2", 1, input_dim),
    )
    layout = {}
    row = 0
    max_col = 0
    for name, nr, nc in entries:
        layout[name] = (row, nr, nc)
        row += _round_up(nr, 16)         # 16-row aligned blocks: bf16 sublane-pack aligned
        max_col = max(max_col, nc)
    return layout, _round_up(row, 16), _round_up(max_col, 128)


def vae_kernel(xin_ref, p_ref, out_ref, *, layout, input_dim, latent_dim):
    f32 = jnp.float32
    bf16 = jnp.bfloat16

    def param(name):
        r0, nr, nc = layout[name]
        return p_ref[r0:r0 + nr, 0:nc]   # static slice of the VMEM-resident bf16 slab

    xin = xin_ref[...]                                    # (tb, 128) bf16  [x | eps | pad]
    x = xin[:, :input_dim]                                # bf16 (fed straight to the MXU)
    eps = xin[:, input_dim:input_dim + latent_dim].astype(f32)

    def dense(act_bf16, w_name, b_name):
        # bf16 x bf16 MXU matmul with f32 accumulation; bias added in f32.
        return (jnp.dot(act_bf16, param(w_name), preferred_element_type=f32)
                + param(b_name).astype(f32))

    relu = lambda v: jnp.maximum(v, 0.0)

    # ---- Encoder ----  (h == 0, so only the x-rows of layer 1 contribute; bias kept)
    a1 = relu(dense(x, "w1x", "b1"))
    a2 = relu(dense(a1.astype(bf16), "w2", "b2"))
    a3 = relu(dense(a2.astype(bf16), "w3", "b3"))

    # Single fused head -> [mean | log_var], split with static column slices (f32 math).
    head = dense(a3.astype(bf16), "w4", "b4")
    mean = head[:, :latent_dim]
    log_var = jnp.clip(head[:, latent_dim:2 * latent_dim], -10.0, 10.0)

    std = jnp.exp(0.5 * log_var)
    z = mean + std * eps                       # dist.rsample()
    lv_out = (0.5 * log_var) ** 2              # dist.scale.log() ** 2 (as in torch code)

    # ---- Decoder ----  (h == 0, so only the z-rows of decoder layer 1 contribute)
    d1 = relu(dense(z.astype(bf16), "wd1z", "bd1"))
    rec = dense(d1.astype(bf16), "wd2", "bd2")

    # Write only the live lanes [rec | mean | lv] in bf16; pad lanes are never touched
    # (the wrapper never reads them) -> no per-step zero fill, half the writeback bytes.
    n_live = input_dim + 2 * latent_dim
    fused = jnp.concatenate([rec, mean, lv_out], axis=-1).astype(out_ref.dtype)
    out_ref[:, 0:n_live] = fused


def init_linear(key, fan_in, fan_out):
    """Torch-style Linear init: U(-1/sqrt(fan_in), 1/sqrt(fan_in)); stored (fan_in, fan_out)."""
    kw, kb = jax.random.split(key)
    bound = 1.0 / math.sqrt(fan_in)
    w = jax.random.uniform(kw, (fan_in, fan_out), jnp.float32, -bound, bound)
    b = jax.random.uniform(kb, (1, fan_out), jnp.float32, -bound, bound)
    return w, b


def make_vae_param_slab(key, input_dim, hidden_dim, latent_dim):
    """Build torch-shaped weights, pack the live slices into one bf16 slab.

    Returns (slab_bf16, pieces_f32) where pieces_f32 holds the bf16-quantized values
    upcast to f32 (so the pure-JAX reference uses bit-identical parameters).
    """
    hi = input_dim + hidden_dim
    d1c, d2c, d3c = hi // 2, hi // 4, hi // 8
    di = latent_dim + hidden_dim

    keys = jax.random.split(key, 6)
    w1, b1 = init_linear(keys[0], hi, d1c)           # full fan_in = hidden+input (torch match)
    w2, b2 = init_linear(keys[1], d1c, d2c)
    w3, b3 = init_linear(keys[2], d2c, d3c)
    w4, b4 = init_linear(keys[3], d3c, 2 * latent_dim)
    wd1, bd1 = init_linear(keys[4], di, 2 * di)
    wd2, bd2 = init_linear(keys[5], 2 * di, input_dim)

    pieces = {
        "w1x": w1[hidden_dim:], "b1": b1,             # cat([h, x]) -> x-rows are the tail
        "w2": w2, "b2": b2,
        "w3": w3, "b3": b3,
        "w4": w4, "b4": b4,
        "wd1z": wd1[:latent_dim], "bd1": bd1,         # cat([z, h]) -> z-rows are the head
        "wd2": wd2, "bd2": bd2,
    }
    pieces_bf16 = {k: v.astype(jnp.bfloat16) for k, v in pieces.items()}

    layout, n_rows, n_cols = _build_layout(input_dim, hidden_dim, latent_dim)
    slab = jnp.zeros((n_rows, n_cols), jnp.bfloat16)
    for name, arr in pieces_bf16.items():
        r0, nr, nc = layout[name]
        slab = slab.at[r0:r0 + nr, 0:nc].set(arr)

    pieces_f32 = {k: v.astype(jnp.float32) for k, v in pieces_bf16.items()}
    return slab, pieces_f32


def _pick_batch_tile(padded_batch):
    """Largest tile (capped at 2048 for VMEM) that still yields >= 2 grid blocks."""
    candidates = (2048, 1024, 512, 256, 128, 64, 32, 16)
    for tb in candidates:                       # prefer >= 2 blocks (v7x 2-TC sharding)
        if padded_batch % tb == 0 and padded_batch // tb >= 2:
            return tb
    for tb in candidates:
        if padded_batch % tb == 0:
            return tb
    return padded_batch


@functools.partial(jax.jit, static_argnames=("input_dim", "hidden_dim", "latent_dim"))
def vae_forward(x, eps, param_slab, *, input_dim, hidden_dim, latent_dim):
    batch = x.shape[0]
    layout, _, _ = _build_layout(input_dim, hidden_dim, latent_dim)
    n_rows, n_cols = param_slab.shape

    in_w = _round_up(input_dim + latent_dim, 128)        # lane-dense [x | eps | pad]
    out_w = _round_up(input_dim + 2 * latent_dim, 128)   # lane-dense [rec | mean | lv | ...]
    n_live = input_dim + 2 * latent_dim

    # Pad the batch: multiple of 16 (bf16 sublane tiles), floor of 32 so grid >= 2.
    padded_batch = _round_up(max(batch, 32), 16)
    tb = _pick_batch_tile(padded_batch)
    grid = (padded_batch // tb,)

    # Pack x and eps into one lane-dense bf16 input slab; pad rows/lanes with zeros.
    xin = jnp.concatenate([x, eps], axis=-1).astype(jnp.bfloat16)
    xin = jnp.pad(xin, ((0, padded_batch - batch), (0, in_w - xin.shape[-1])))

    # Cost estimate (scheduler hint): this kernel is DMA/overhead bound, not MXU bound.
    hi = input_dim + hidden_dim
    d1c, d2c, d3c = hi // 2, hi // 4, hi // 8
    di = latent_dim + hidden_dim
    flops = 2 * padded_batch * (input_dim * d1c + d1c * d2c + d2c * d3c
                                + d3c * 2 * latent_dim + latent_dim * 2 * di
                                + 2 * di * input_dim)
    bytes_accessed = 2 * (padded_batch * in_w + padded_batch * out_w + n_rows * n_cols)

    kernel = functools.partial(
        vae_kernel, layout=layout, input_dim=input_dim, latent_dim=latent_dim)

    fused = pl.pallas_call(
        kernel,
        out_shape=jax.ShapeDtypeStruct((padded_batch, out_w), jnp.bfloat16),
        grid=grid,
        in_specs=[
            pl.BlockSpec((tb, in_w), lambda i: (i, 0)),        # [x|eps] tile (bf16)
            pl.BlockSpec((n_rows, n_cols), lambda i: (0, 0)),  # weight slab (VMEM-resident)
        ],
        out_specs=pl.BlockSpec((tb, out_w), lambda i: (i, 0)),
        compiler_params=pltpu.CompilerParams(
            dimension_semantics=("parallel",),                 # v7x: shard batch over 2 TCs
            vmem_limit_bytes=32 * 1024 * 1024),
        cost_estimate=pl.CostEstimate(
            flops=flops,
            transcendentals=padded_batch * latent_dim,
            bytes_accessed=bytes_accessed),
    )(xin, param_slab)

    rec = fused[:batch, :input_dim].astype(jnp.float32)
    mean = fused[:batch, input_dim:input_dim + latent_dim].astype(jnp.float32)
    log_var = fused[:batch, input_dim + latent_dim:n_live].astype(jnp.float32)
    return rec, mean, log_var


def vae_reference(x, eps, pieces):
    """Pure-JAX f32 reference with identical math (h == 0 path, bf16-quantized params)."""
    relu = lambda v: jnp.maximum(v, 0.0)
    a1 = relu(x @ pieces["w1x"] + pieces["b1"])
    a2 = relu(a1 @ pieces["w2"] + pieces["b2"])
    a3 = relu(a2 @ pieces["w3"] + pieces["b3"])
    head = a3 @ pieces["w4"] + pieces["b4"]
    latent = pieces["w4"].shape[1] // 2
    mean = head[:, :latent]
    log_var = jnp.clip(head[:, latent:], -10.0, 10.0)
    std = jnp.exp(0.5 * log_var)
    z = mean + std * eps
    lv = (0.5 * log_var) ** 2
    d1 = relu(z @ pieces["wd1z"] + pieces["bd1"])
    rec = d1 @ pieces["wd2"] + pieces["bd2"]
    return rec, mean, lv


if __name__ == "__main__":
    # Small, module-consistent shapes.
    batch_size = 8
    input_dim = 32
    hidden_dim = 32
    latent_dim = 8

    root = jax.random.PRNGKey(0)
    k_params, k_x, k_eps = jax.random.split(root, 3)

    slab, pieces = make_vae_param_slab(k_params, input_dim, hidden_dim, latent_dim)
    x = jax.random.normal(k_x, (batch_size, input_dim), jnp.float32)
    eps = jax.random.normal(k_eps, (batch_size, latent_dim), jnp.float32)  # rsample noise

    reconstructed, mean, log_var = vae_forward(
        x, eps, slab,
        input_dim=input_dim, hidden_dim=hidden_dim, latent_dim=latent_dim)
    jax.block_until_ready((reconstructed, mean, log_var))

    assert reconstructed.shape == (batch_size, input_dim)
    assert mean.shape == (batch_size, latent_dim)
    assert log_var.shape == (batch_size, latent_dim)

    # Reference sees the same bf16-quantized inputs/params the kernel consumes;
    # remaining differences are per-layer bf16 activation rounding + bf16 output store.
    x_q = x.astype(jnp.bfloat16).astype(jnp.float32)
    eps_q = eps.astype(jnp.bfloat16).astype(jnp.float32)
    r_rec, r_mean, r_lv = vae_reference(x_q, eps_q, pieces)
    assert jnp.allclose(reconstructed, r_rec, rtol=1e-2, atol=1e-2)
    assert jnp.allclose(mean, r_mean, rtol=1e-2, atol=1e-2)
    assert jnp.allclose(log_var, r_lv, rtol=1e-2, atol=1e-2)

    print("KERNEL_OK")
</pallas_src>

<mosaic_0001>
module attributes {stable_mosaic.version = 11 : i64} {
  func.func @vae_kernel(%arg0: i32, %arg1: memref<16x128xbf16, #tpu.memory_space<vmem>>, %arg2: memref<288x128xbf16, #tpu.memory_space<vmem>>, %arg3: memref<16x128xbf16, #tpu.memory_space<vmem>>) attributes {dimension_semantics = [#tpu.dimension_semantics<parallel>], iteration_bounds = array<i64: 2>, scalar_prefetch = 0 : i64, scratch_operands = 0 : i64, tpu.core_type = #tpu.core_type<tc>, window_params = [{transform_indices = @transform_0, window_bounds = array<i64: 16, 128>}, {pipeline_mode = #tpu.pipeline_mode<synchronous>, transform_indices = @transform_1, window_bounds = array<i64: 288, 128>}, {transform_indices = @transform_2, window_bounds = array<i64: 16, 128>}]} {
    %c0 = arith.constant 0 : index
    %c0_0 = arith.constant 0 : index
    %0 = vector.load %arg1[%c0, %c0_0] : memref<16x128xbf16, #tpu.memory_space<vmem>>, vector<16x128xbf16>
    %1 = vector.extract_strided_slice %0 {offsets = [0, 0], sizes = [16, 32], strides = [1, 1]} : vector<16x128xbf16> to vector<16x32xbf16>
    %2 = vector.extract_strided_slice %0 {offsets = [0, 32], sizes = [16, 8], strides = [1, 1]} : vector<16x128xbf16> to vector<16x8xbf16>
    %3 = arith.extf %2 : vector<16x8xbf16> to vector<16x8xf32>
    %c0_1 = arith.constant 0 : index
    %c0_2 = arith.constant 0 : index
    %4 = vector.load %arg2[%c0_1, %c0_2] : memref<288x128xbf16, #tpu.memory_space<vmem>>, vector<32x32xbf16>
    %cst = arith.constant dense<0.000000e+00> : vector<16x32xf32>
    %5 = tpu.matmul %1, %4, %cst {dimension_numbers = #tpu.dot_dimension_numbers<[1], [0], [0], [1], [0, 0, 1, 1], [], []>} : vector<16x32xbf16>, vector<32x32xbf16>, vector<16x32xf32> -> vector<16x32xf32>
    %c32 = arith.constant 32 : index
    %c0_3 = arith.constant 0 : index
    %6 = vector.load %arg2[%c32, %c0_3] : memref<288x128xbf16, #tpu.memory_space<vmem>>, vector<1x32xbf16>
    %7 = arith.extf %6 : vector<1x32xbf16> to vector<1x32xf32>
    %8 = vector.broadcast %7 : vector<1x32xf32> to vector<16x32xf32>
    %9 = arith.addf %5, %8 : vector<16x32xf32>
    %cst_4 = arith.constant 0.000000e+00 : f32
    %10 = vector.broadcast %cst_4 : f32 to vector<16x32xf32>
    %11 = arith.maximumf %9, %10 : vector<16x32xf32>
    %12 = arith.truncf %11 : vector<16x32xf32> to vector<16x32xbf16>
    %c48 = arith.constant 48 : index
    %c0_5 = arith.constant 0 : index
    %13 = vector.load %arg2[%c48, %c0_5] : memref<288x128xbf16, #tpu.memory_space<vmem>>, vector<32x16xbf16>
    %cst_6 = arith.constant dense<0.000000e+00> : vector<16x16xf32>
    %14 = tpu.matmul %12, %13, %cst_6 {dimension_numbers = #tpu.dot_dimension_numbers<[1], [0], [0], [1], [0, 0, 1, 1], [], []>} : vector<16x32xbf16>, vector<32x16xbf16>, vector<16x16xf32> -> vector<16x16xf32>
    %c80 = arith.constant 80 : index
    %c0_7 = arith.constant 0 : index
    %15 = vector.load %arg2[%c80, %c0_7] : memref<288x128xbf16, #tpu.memory_space<vmem>>, vector<1x16xbf16>
    %16 = arith.extf %15 : vector<1x16xbf16> to vector<1x16xf32>
    %17 = vector.broadcast %16 : vector<1x16xf32> to vector<16x16xf32>
    %18 = arith.addf %14, %17 : vector<16x16xf32>
    %cst_8 = arith.constant 0.000000e+00 : f32
    %19 = vector.broadcast %cst_8 : f32 to vector<16x16xf32>
    %20 = arith.maximumf %18, %19 : vector<16x16xf32>
    %21 = arith.truncf %20 : vector<16x16xf32> to vector<16x16xbf16>
    %c96 = arith.constant 96 : index
    %c0_9 = arith.constant 0 : index
    %22 = vector.load %arg2[%c96, %c0_9] : memref<288x128xbf16, #tpu.memory_space<vmem>>, vector<16x8xbf16>
    %cst_10 = arith.constant dense<0.000000e+00> : vector<16x8xf32>
    %23 = tpu.matmul %21, %22, %cst_10 {dimension_numbers = #tpu.dot_dimension_numbers<[1], [0], [0], [1], [0, 0, 1, 1], [], []>} : vector<16x16xbf16>, vector<16x8xbf16>, vector<16x8xf32> -> vector<16x8xf32>
    %c112 = arith.constant 112 : index
    %c0_11 = arith.constant 0 : index
    %24 = vector.load %arg2[%c112, %c0_11] : memref<288x128xbf16, #tpu.memory_space<vmem>>, vector<1x8xbf16>
    %25 = arith.extf %24 : vector<1x8xbf16> to vector<1x8xf32>
    %26 = vector.broadcast %25 : vector<1x8xf32> to vector<16x8xf32>
    %27 = arith.addf %23, %26 : vector<16x8xf32>
    %cst_12 = arith.constant 0.000000e+00 : f32
    %28 = vector.broadcast %cst_12 : f32 to vector<16x8xf32>
    %29 = arith.maximumf %27, %28 : vector<16x8xf32>
    %30 = arith.truncf %29 : vector<16x8xf32> to vector<16x8xbf16>
    %c128 = arith.constant 128 : index
    %c0_13 = arith.constant 0 : index
    %31 = vector.load %arg2[%c128, %c0_13] : memref<288x128xbf16, #tpu.memory_space<vmem>>, vector<8x16xbf16>
    %cst_14 = arith.constant dense<0.000000e+00> : vector<16x16xf32>
    %32 = tpu.matmul %30, %31, %cst_14 {dimension_numbers = #tpu.dot_dimension_numbers<[1], [0], [0], [1], [0, 0, 1, 1], [], []>} : vector<16x8xbf16>, vector<8x16xbf16>, vector<16x16xf32> -> vector<16x16xf32>
    %c144 = arith.constant 144 : index
    %c0_15 = arith.constant 0 : index
    %33 = vector.load %arg2[%c144, %c0_15] : memref<288x128xbf16, #tpu.memory_space<vmem>>, vector<1x16xbf16>
    %34 = arith.extf %33 : vector<1x16xbf16> to vector<1x16xf32>
    %35 = vector.broadcast %34 : vector<1x16xf32> to vector<16x16xf32>
    %36 = arith.addf %32, %35 : vector<16x16xf32>
    %37 = vector.extract_strided_slice %36 {offsets = [0, 0], sizes = [16, 8], strides = [1, 1]} : vector<16x16xf32> to vector<16x8xf32>
    %38 = vector.extract_strided_slice %36 {offsets = [0, 8], sizes = [16, 8], strides = [1, 1]} : vector<16x16xf32> to vector<16x8xf32>
    %cst_16 = arith.constant -1.000000e+01 : f32
    %cst_17 = arith.constant 1.000000e+01 : f32
    %39 = vector.broadcast %cst_16 : f32 to vector<16x8xf32>
    %40 = arith.maximumf %39, %38 : vector<16x8xf32>
    %41 = vector.broadcast %cst_17 : f32 to vector<16x8xf32>
    %42 = arith.minimumf %41, %40 : vector<16x8xf32>
    %cst_18 = arith.constant 5.000000e-01 : f32
    %43 = vector.broadcast %cst_18 : f32 to vector<16x8xf32>
    %44 = arith.mulf %43, %42 : vector<16x8xf32>
    %45 = math.exp %44 : vector<16x8xf32>
    %46 = arith.mulf %45, %3 : vector<16x8xf32>
    %47 = arith.addf %37, %46 : vector<16x8xf32>
    %cst_19 = arith.constant 5.000000e-01 : f32
    %48 = vector.broadcast %cst_19 : f32 to vector<16x8xf32>
    %49 = arith.mulf %48, %42 : vector<16x8xf32>
    %50 = arith.mulf %49, %49 : vector<16x8xf32>
    %51 = arith.truncf %47 : vector<16x8xf32> to vector<16x8xbf16>
    %c160 = arith.constant 160 : index
    %c0_20 = arith.constant 0 : index
    %52 = vector.load %arg2[%c160, %c0_20] : memref<288x128xbf16, #tpu.memory_space<vmem>>, vector<8x80xbf16>
    %cst_21 = arith.constant dense<0.000000e+00> : vector<16x80xf32>
    %53 = tpu.matmul %51, %52, %cst_21 {dimension_numbers = #tpu.dot_dimension_numbers<[1], [0], [0], [1], [0, 0, 1, 1], [], []>} : vector<16x8xbf16>, vector<8x80xbf16>, vector<16x80xf32> -> vector<16x80xf32>
    %c176 = arith.constant 176 : index
    %c0_22 = arith.constant 0 : index
    %54 = vector.load %arg2[%c176, %c0_22] : memref<288x128xbf16, #tpu.memory_space<vmem>>, vector<1x80xbf16>
    %55 = arith.extf %54 : vector<1x80xbf16> to vector<1x80xf32>
    %56 = vector.broadcast %55 : vector<1x80xf32> to vector<16x80xf32>
    %57 = arith.addf %53, %56 : vector<16x80xf32>
    %cst_23 = arith.constant 0.000000e+00 : f32
    %58 = vector.broadcast %cst_23 : f32 to vector<16x80xf32>
    %59 = arith.maximumf %57, %58 : vector<16x80xf32>
    %60 = arith.truncf %59 : vector<16x80xf32> to vector<16x80xbf16>
    %c192 = arith.constant 192 : index
    %c0_24 = arith.constant 0 : index
    %61 = vector.load %arg2[%c192, %c0_24] : memref<288x128xbf16, #tpu.memory_space<vmem>>, vector<80x32xbf16>
    %cst_25 = arith.constant dense<0.000000e+00> : vector<16x32xf32>
    %62 = tpu.matmul %60, %61, %cst_25 {dimension_numbers = #tpu.dot_dimension_numbers<[1], [0], [0], [1], [0, 0, 1, 1], [], []>} : vector<16x80xbf16>, vector<80x32xbf16>, vector<16x32xf32> -> vector<16x32xf32>
    %c272 = arith.constant 272 : index
    %c0_26 = arith.constant 0 : index
    %63 = vector.load %arg2[%c272, %c0_26] : memref<288x128xbf16, #tpu.memory_space<vmem>>, vector<1x32xbf16>
    %64 = arith.extf %63 : vector<1x32xbf16> to vector<1x32xf32>
    %65 = vector.broadcast %64 : vector<1x32xf32> to vector<16x32xf32>
    %66 = arith.addf %62, %65 : vector<16x32xf32>
    %67 = tpu.concatenate %66, %37, %50 in 1 : vector<16x32xf32>, vector<16x8xf32>, vector<16x8xf32> -> vector<16x48xf32>
    %68 = arith.truncf %67 : vector<16x48xf32> to vector<16x48xbf16>
    %c0_27 = arith.constant 0 : index
    %c0_28 = arith.constant 0 : index
    %69 = vector.load %arg3[%c0_27, %c0_28] : memref<16x128xbf16, #tpu.memory_space<vmem>>, vector<16x48xbf16>
    tpu.vector_store %arg3[%c0_27, %c0_28], %68 {strides = array<i32>} : memref<16x128xbf16, #tpu.memory_space<vmem>>, vector<16x48xbf16>,
    return
  }
  func.func @transform_0(%arg0: i32) -> (i32, i32) {
    %c0_i32 = arith.constant 0 : i32
    %c0_i32_0 = arith.constant 0 : i32
    return %arg0, %c0_i32 : i32, i32
  }
  func.func @transform_1(%arg0: i32) -> (i32, i32) {
    %c0_i32 = arith.constant 0 : i32
    %c0_i32_0 = arith.constant 0 : i32
    %c0_i32_1 = arith.constant 0 : i32
    return %c0_i32, %c0_i32_0 : i32, i32
  }
  func.func @transform_2(%arg0: i32) -> (i32, i32) {
    %c0_i32 = arith.constant 0 : i32
    %c0_i32_0 = arith.constant 0 : i32
    return %arg0, %c0_i32 : i32, i32
  }
}

</mosaic_0001>

<bundles_post_ra>
// kernel: vae_forward.1
= control target key start
LH: loop header
LB: loop body
LE: loop exit
PB: predicated region body
PF: predicated region fallthrough
CT: control target
= control target key end

     0   :  { %7 = vsyncpa [#allocation3], 0  ;;  %s930_s9 = smov 0   ;;  %s1013_s0 = inlined_call_operand.vmem [shape: bf16[32,128], index: 0, kind: input, shape index: {}]   ;;  %s1014_s1 = inlined_call_operand.hbm [shape: bf16[288,128], index: 1, kind: input, shape index: {}]   ;;  %s1015_s2 = inlined_call_operand.vmem [shape: bf16[32,128], index: 2, kind: output, shape index: {}]  }
   0x1 LB: > { %s710_s10 = sadd.s32 4294967295, %s905_s9   ;;  %p712_p0 = scmp.ge.s32.totalorder %s905_s9, 1  ;;  %s905_s9 = sphi %s930_s9, %s13_s9  }
   0x2   : > { %p91_p1 = scmp.lt.s32.totalorder %s905_s9, 3  ;;  %s907_s11 = smov [#allocation2]  }
   0x3   : > { %s103_s12 = sshll.u32 %s907_s11, 4  ;;  %p942_p3 = scmp.eq.s32.totalorder %s710_s10, 0  ;;  %s104_s12 = int_to_ptr.vmem [resolvable:$true] %s103_s12 }
   0x4   : > { %p938_p2 = pnand %p712_p0, %p91_p1  ;;  %s880_s15 = scalar_lea.vmem %s104_s12, 2304 }
   0x5   : > { %p881_p7 = scmp.ne.s32.totalorder %s104_s12, %s880_s15  ;;  %p888_p10 = scmp.lt.s32.totalorder %s104_s12, %s104_s12 }
   0x6   : > { %p816_p4 = pneg %p938_p2  ;;  %p889_p11 = scmp.lt.s32.totalorder %s880_s15, %s880_s15 }
   0x8   : > { %p817_p5 = pnand %p942_p3, %p816_p4  ;;  %p890_p12 = por %p889_p11, %p888_p10 }
   0xa   : > { %p871_p6 = pneg %p817_p5 }
   0xc   : > { %p883_p8 = pnand %p881_p7, %p871_p6 }
   0xe   : > { %p884_p9 = pneg %p883_p8 }
  0x10   : > { %p891_p13 = pnand %p890_p12, %p884_p9 }
  0x12   : > { %894 = shalt.err (!%p891_p13)
}
  0x13   : > { %s908_s16 = smov 64   ;;  %s909_s17 = smov 4  }
  0x14   : > { %819 = dma.hbm_to_vmem [thread:$0]  (!%p817_p5), %s1014_s1, 2304, %s104_s12, [#allocation3], %s908_s16, %s908_s16, %s909_s17  }
  0x15   : > { %128 = sbr.rel (%p938_p2) target bundleno = 1393 (0x571), region = 28 }
  0x1a   : > { %900 = dma.done.wait (%p942_p3), [#allocation3], 2304  }
  0x1b   : > { %902 = vsyncadd (%p942_p3), [#allocation3], 4294964992  ;;  %s717_s20 = sshll.u32 %s710_s10, 1  ;;  %v910_v0 = vmov 0.0   ;;  %vm911_vm0 = vmmov 0   ;;  %v853_v1 = vld [vmem:[#allocation2 + $0x8] sm:$0xff]   ;;  %v173_v6 = vlaneseq }
  0x1c   : > { %764 = vmatprep.subr.bf16.mxu0 %v910_v0  ;;  %768 = vmatprep.mubr.msk.bf16.mxu0 %vm911_vm0, %v910_v0  ;;  %p151_p0 = scmp.lt.s32.totalorder %s717_s20, 3  ;;  %v854_v2 = vld [vmem:[#allocation2] sm:$0xff]   ;;  %vm194_vm1 = vcmask 261120   ;;  %v857_v5 = vld [vmem:[#allocation2 + $0x18] sm:$0xff]   ;;  %v171_v8 = vld [vmem:[#allocation2 + $0x10] sm:$0x1] }
  0x1d   : > { %786 = vmatprep.subr.bf16.mxu1 %v910_v0  ;;  %788 = vmatprep.mubr.msk.bf16.mxu1 %vm911_vm0, %v910_v0  ;;  %v856_v4 = vld [vmem:[#allocation2 + $0x20] sm:$0xff]   ;;  %v174_v7 = vshrl.u32 %v173_v6, 7  ;;  %v172_v9 = vunpack.c.l.bf16 %v171_v8  ;;  %v858_v21 = vld [vmem:[#allocation2 + $0x30] sm:$0xff]   ;;  %v246_v22 = vld [vmem:[#allocation2 + $0x28] sm:$0x1]  ;;  %vm325_vm2 = vcmask 130048  }
  0x1e   : > { %s1019_s20 = smov (!%p151_p0, %s717_s20), 3  ;;  %765 = vmatpush3.bf16.msra.mxu0 %v853_v1  ;;  %v247_v23 = vunpack.c.l.bf16 %v246_v22  ;;  %v373_v34 = vld [vmem:[#allocation2 + $0x40] sm:$0xf]  ;;  %vm384_vm3 = vcmask 1043456   ;;  %v462_v36 = vld [vmem:[#allocation2 + $0x50] sm:$0xf] }
  0x1f   : > { %s718_s21 = sshll.u32 %s1019_s20, 2  ;;  %766 = vmatprep.subr.bf16.mxu0 %v910_v0  ;;  %v980_v10 = vsub.s32 0, %v174_v7  ;;  %v386_v35 = vsel %vm384_vm3, %v373_v34, 0  ;;  %v473_v37 = vsel %vm384_vm3, %v462_v36, 0  ;;  %s912_s25 = smov 104   ;;  %vm380_vm4 = vcmask 64512  }
  0x20   : > { %s154_s24 = scalar_lea.vmem %s1013_s0, %s718_s21  ;;  %787 = vmatpush3.bf16.msra.mxu1 %v386_v35  ;;  %v313_v41 = vld [vmem:[#allocation2 + $0x38] sm:$0x1]  ;;  %v374_v53 = vld [vmem:[#allocation2 + $0x48] sm:$0x1]  ;;  %v859_v7 = vld [vmem:[#allocation2 + $0x80] sm:$0xff]   ;;  %s913_s26 = smov 120  }
  0x21   : > { %v163_v3 = vld [vmem:[%s154_s24] sm:$0xff]   ;;  %v176_v11 = vrot.slane %v172_v9, %v980_v10  ;;  %v251_v24 = vrot.slane %v247_v23, %v980_v10  ;;  %798 = vmatprep.subr.bf16.mxu1 %v910_v0  ;;  %v314_v42 = vunpack.c.l.bf16 %v313_v41  ;;  %v375_v54 = vunpack.c.l.bf16 %v374_v53  ;;  %v860_v9 = vld [vmem:[#allocation2 + $0x78] sm:$0xff]   ;;  %s914_s27 = smov 32   ;;  %s160_s30 = scalar_lea.vmem %s1015_s2, %s718_s21 }
  0x22   : > { %767 = vmatpush3.bf16.msra.mxu0 %v854_v2  ;;  %v165_v38 = vunpack.c.l.bf16 %v163_v3  ;;  %v166_v39 = vunpack.c.h.bf16 %v163_v3  ;;  %vm565_vm5 = vcmask 654336   ;;  %vm628_vm6 = vcmask 326656  }
  0x23   : > { %772 = vmatprep.subr.bf16.mxu0 %v910_v0  ;;  %v318_v43 = vrot.slane %v314_v42, %v980_v10  ;;  %v379_v55 = vrot.slane %v375_v54, %v980_v10  ;;  %vm639_vm7 = vcmask 388096  }
  0x24   : > { %v838_v40 = vpack.i.bf16 %v166_v39, %v165_v38  ;;  %v529_v39 = vld [vmem:[#allocation2 + $0x88] sm:$0x1] }
  0x25   : > { %769 = vmatmul.mubr.msk.bf16.vlgmr.msra.gmra.mxu0 %vm194_vm1, %v163_v3 }
  0x26   : > { %776 = vmatprep.mubr.msk.bf16.mxu0 %vm911_vm0, %v910_v0  ;;  %773 = vmatpush3.bf16.msra.mxu0 %v856_v4 }
  0x27   : > { %774 = vmatprep.subr.bf16.mxu0 %v910_v0  ;;  %839 = vrot.lane.b32.xlu0 %v838_v40, %s912_s25 }
  0x2a   : > { %775 = vmatpush3.bf16.msra.mxu0 %v857_v5 }
  0x2b   : > { %780 = vmatprep.subr.bf16.mxu0 %v910_v0 }
  0x99   : > { %v840_v5 = vpop.permute.xlu0 %839 }
  0x9a   : > { %v841_v6 = vunpack.i.l.bf16 %v840_v5 }
  0xe5   : > { %v232_v12 = vpop.f32.mrf.mxu0 }
  0xe6   : > { %v233_v14 = vadd.f32 %v232_v12, %v176_v11 }
  0xe7   : > { %v770_v13 = vpop.f32.mrf.mxu0 }
  0xe8   : > { %v239_v18 = vmax.f32 %v233_v14, 0.0 }
  0xe9   : > { %v235_v15 = vpop.f32.mrf.mxu0 }
  0xea   : > { %v236_v16 = vadd.f32 %v235_v15, %v176_v11  ;;  %v842_v11 = vunpack.i.h.bf16 %v840_v5 }
  0xeb   : > { %v771_v17 = vpop.f32.mrf.mxu0 }
  0xec   : > { %v240_v19 = vmax.f32 %v236_v16, 0.0 }
  0xee   : > { %v241_v20 = vpack.c.bf16 %v240_v19, %v239_v18 }
  0xf0   : > { %777 = vmatmul.mubr.msk.bf16.vlgmr.msra.gmra.mxu0 %vm194_vm1, %v241_v20 }
  0xf1   : > { %782 = vmatprep.mubr.msk.bf16.mxu0 %vm911_vm0, %v910_v0  ;;  %781 = vmatpush3.bf16.msra.mxu0 %v858_v21 }
  0xf2   : > { %792 = vmatprep.subr.bf16.mxu0 %v910_v0 }
 0x1b0   : > { %v301_v25 = vpop.f32.mrf.mxu0 }
 0x1b1   : > { %v302_v27 = vadd.f32 %v301_v25, %v251_v24  ;;  %v862_v25 = vld [vmem:[#allocation2 + $0x68] sm:$0xff]  }
 0x1b2   : > { %v778_v26 = vpop.f32.mrf.mxu0 }
 0x1b3   : > { %v308_v31 = vmax.f32 %v302_v27, 0.0  ;;  %v863_v26 = vld [vmem:[#allocation2 + $0x60] sm:$0xff]   ;;  %v463_v27 = vld [vmem:[#allocation2 + $0x58] sm:$0x1] }
 0x1b4   : > { %v304_v28 = vpop.f32.mrf.mxu0 }
 0x1b5   : > { %v305_v29 = vadd.f32 %v304_v28, %v251_v24  ;;  %v861_v24 = vld [vmem:[#allocation2 + $0x70] sm:$0xff]   ;;  %v464_v28 = vunpack.c.l.bf16 %v463_v27 }
 0x1b6   : > { %v779_v30 = vpop.f32.mrf.mxu0 }
 0x1b7   : > { %v309_v32 = vmax.f32 %v305_v29, 0.0  ;;  %v468_v29 = vrot.slane %v464_v28, %v980_v10 }
 0x1b9   : > { %v310_v33 = vpack.c.bf16 %v309_v32, %v308_v31 }
 0x1bb   : > { %783 = vmatmul.mubr.msk.bf16.vlgmr.msra.gmra.mxu0 %vm325_vm2, %v310_v33 }
 0x1bc   : > { %794 = vmatprep.mubr.msk.bf16.mxu0 %vm911_vm0, %v910_v0  ;;  %793 = vmatpush3.bf16.msra.mxu0 %v473_v37 }
 0x27b   : > { %v363_v44 = vpop.f32.mrf.mxu0 }
 0x27c   : > { %v364_v46 = vadd.f32 %v363_v44, %v318_v43 }
 0x27d   : > { %v784_v45 = vpop.f32.mrf.mxu0 }
 0x27e   : > { %v370_v50 = vmax.f32 %v364_v46, 0.0 }
 0x27f   : > { %v366_v47 = vpop.f32.mrf.mxu0 }
 0x280   : > { %v367_v48 = vadd.f32 %v366_v47, %v318_v43 }
 0x281   : > { %v785_v49 = vpop.f32.mrf.mxu0 }
 0x282   : > { %v371_v51 = vmax.f32 %v367_v48, 0.0 }
 0x284   : > { %v372_v52 = vpack.c.bf16 %v371_v51, %v370_v50 }
 0x286   : > { %789 = vmatmul.mubr.msk.bf16.vlgmr.msra.gmra.mxu1 %vm380_vm4, %v372_v52 }
 0x287   : > { %808 = vmatprep.mubr.msk.bf16.mxu1 %vm911_vm0, %v910_v0  ;;  %799 = vmatpush3.bf16.msra.mxu1 %v859_v7 }
 0x288   : > { %800 = vmatprep.subr.bf16.mxu1 %v910_v0 }
 0x28b   : > { %801 = vmatpush3.bf16.msra.mxu1 %v860_v9 }
 0x28c   : > { %802 = vmatprep.subr.bf16.mxu1 %v910_v0 }
 0x28f   : > { %803 = vmatpush3.bf16.msra.mxu1 %v861_v24 }
 0x290   : > { %804 = vmatprep.subr.bf16.mxu1 %v910_v0 }
 0x293   : > { %805 = vmatpush3.bf16.msra.mxu1 %v862_v25 }
 0x294   : > { %806 = vmatprep.subr.bf16.mxu1 %v910_v0  ;;  %v530_v0 = vunpack.c.l.bf16 %v529_v39 }
 0x296   : > { %v534_v40 = vrot.slane %v530_v0, %v980_v10 }
 0x297   : > { %807 = vmatpush3.bf16.msra.mxu1 %v863_v26 }
 0x346   : > { %v422_v56 = vpop.f32.mrf.mxu1 }
 0x347   : > { %v423_v57 = vadd.f32 %v422_v56, %v379_v55 }
 0x348   : > { %v790_v58 = vpop.f32.mrf.mxu1 }
 0x349   : > { %v731_v59 = vclamps-f32 %v423_v57, 10.0 }
 0x34a   : > { %v425_v60 = vpop.f32.mrf.mxu1 }
 0x34b   : > { %v433_v61 = vmul.f32 0.5, %v731_v59  ;;  %v426_v62 = vadd.f32 %v425_v60, %v379_v55 }
 0x34c   : > { %v791_v63 = vpop.f32.mrf.mxu1 }
 0x34d   : > { %v435_v1 = vmul.f32 1.442695, %v433_v61  ;;  %v732_v2 = vclamps-f32 %v426_v62, 10.0  ;;  %v459_v14 = vmul.f32 %v433_v61, %v433_v61  ;;  %v843_v18 = vpack.i.bf16 %v426_v62, %v423_v57 }
 0x34f   : > { %865 = vpow2.f32 %v435_v1  ;;  %v434_v3 = vmul.f32 0.5, %v732_v2 }
 0x351   : > { %v437_v4 = vmul.f32 1.442695, %v434_v3  ;;  %v460_v13 = vmul.f32 %v434_v3, %v434_v3 }
 0x353   : > { %867 = vpow2.f32 %v437_v4  ;;  %v848_v17 = vpack.i.bf16 %v460_v13, %v459_v14 }
 0x35c   : > { %v866_v8 = vpop.eup %865 }
 0x35d   : > { %v447_v12 = vmul.f32 %v866_v8, %v841_v6 }
 0x35f   : > { %451 = vrot.lane.b32.xlu0 %v447_v12, %s913_s26 }
 0x360   : > { %v868_v15 = vpop.eup %867 }
 0x361   : > { %v448_v16 = vmul.f32 %v868_v15, %v842_v11 }
 0x363   : > { %453 = vrot.lane.b32.xlu1 %v448_v16, %s913_s26  ;;  %849 = vrot.lane.b32.xlu0 %v848_v17, %s914_s27 }
 0x367   : > { %844 = vrot.lane.b32.xlu1 %v843_v18, %s914_s27 }
 0x3d1   : > { %v452_v19 = vpop.permute.xlu0 %451 }
 0x3d2   : > { %v457_v21 = vadd.f32 %v452_v19, %v423_v57 }
 0x3d5   : > { %v454_v20 = vpop.permute.xlu1 %453  ;;  %v850_v42 = vpop.permute.xlu0 %849 }
 0x3d6   : > { %v458_v22 = vadd.f32 %v454_v20, %v426_v62  ;;  %v851_v46 = vunpack.i.l.bf16 %v850_v42  ;;  %v852_v53 = vunpack.i.h.bf16 %v850_v42 }
 0x3d8   : > { %v461_v23 = vpack.c.bf16 %v458_v22, %v457_v21 }
 0x3d9   : > { %v845_v41 = vpop.permute.xlu1 %844 }
 0x3da   : > { %795 = vmatmul.mubr.msk.bf16.vlgmr.msra.gmra.mxu0 %vm380_vm4, %v461_v23  ;;  %v846_v44 = vunpack.i.l.bf16 %v845_v41  ;;  %v847_v51 = vunpack.i.h.bf16 %v845_v41 }
 0x49a   : > { %v509_v30 = vpop.f32.mrf.mxu0 }
 0x49b   : > { %v510_v32 = vadd.f32 %v509_v30, %v468_v29 }
 0x49c   : > { %v796_v31 = vpop.f32.mrf.mxu0 }
 0x49d   : > { %v516_v36 = vmax.f32 %v510_v32, 0.0 }
 0x49e   : > { %v512_v33 = vpop.f32.mrf.mxu0 }
 0x49f   : > { %v513_v34 = vadd.f32 %v512_v33, %v468_v29 }
 0x4a0   : > { %v797_v35 = vpop.f32.mrf.mxu0 }
 0x4a1   : > { %v517_v37 = vmax.f32 %v513_v34, 0.0 }
 0x4a3   : > { %v518_v38 = vpack.c.bf16 %v517_v37, %v516_v36 }
 0x4a5   : > { %809 = vmatmul.mubr.msk.bf16.vlgmr.msra.gmra.mxu1 %vm565_vm5, %v518_v38 }
 0x565   : > { %v603_v43 = vpop.f32.mrf.mxu1 }
 0x566   : > { %v604_v45 = vadd.f32 %v603_v43, %v534_v40 }
 0x567   : > { %v810_v47 = vpop.f32.mrf.mxu1 }
 0x568   : > { %v626_v48 = vsel %vm194_vm1, %v604_v45, %v846_v44 }
 0x569   : > { %v629_v49 = vsel %vm628_vm6, %v626_v48, %v851_v46  ;;  %v606_v50 = vpop.f32.mrf.mxu1 }
 0x56a   : > { %v744_v10 = vpack.c.bf16 %v629_v49, %v629_v49  ;;  %v607_v52 = vadd.f32 %v606_v50, %v534_v40 }
 0x56b   : > { %v811_v54 = vpop.f32.mrf.mxu1 }
 0x56c   : > { %640 = vst.msk [vmem:[%s160_s30] sm:$0xf] %vm639_vm7, %v744_v10  ;;  %v627_v55 = vsel %vm194_vm1, %v607_v52, %v847_v51 }
 0x56d   : > { %v630_v56 = vsel %vm628_vm6, %v627_v55, %v852_v53 }
 0x56e   : > { %v745_v57 = vpack.c.bf16 %v630_v56, %v630_v56 }
 0x570   : > { %641 = vst.msk [vmem:[%s160_s30 + $0x4] sm:$0xf] %vm639_vm7, %v745_v57 }
 0x571 PF: > { %s13_s9 = sadd.s32 1, %s905_s9  }
 0x572   : > { %p10_p1 = scmp.ge.s32.totalorder %s13_s9, 4  }
 0x574   :  { %12 = sbr.rel (!%p10_p1) target bundleno = 1 (0x1), region = 63 }
 0x579   :  { %664 = vsyncpa [#allocation3], 1 }
 0x57a   :  { %666 = vsyncpa [#allocation3 + $0x1], 1 }

</bundles_post_ra>
